<compile_context>
chip_gen: v7x
topology: tpu7x:2x2x1
jax: 0.10.0
libtpu: 0.0.40
codegen_flags: <defaults>
</compile_context>

<pallas_src>
import functools

import jax
import jax.numpy as jnp
from jax import lax
from jax.experimental import pallas as pl
from jax.experimental.pallas import tpu as pltpu


def _same_pads(size, stride, filt=3):
  """TF SAME padding amounts, identical to the module's get_same_padding."""
  if size % stride == 0:
    pad_along = max(filt - stride, 0)
  else:
    pad_along = max(filt - size % stride, 0)
  lo = pad_along // 2
  return lo, pad_along - lo


def _pick_h_tile(h_out, max_tile):
  """Largest divisor of h_out that is <= max_tile and 8-aligned (or h_out)."""
  if h_out <= max_tile:
    return h_out
  for t in range(max_tile, 7, -1):
    if h_out % t == 0 and t % 8 == 0:
      return t
  return h_out  # no aligned divisor: fall back to a single (untiled) block


def _conv_subsample_kernel(x_ref, w_ref, b_ref, m_ref, out_ref, *,
                           h_tile, w_out, c_in, use_tanh, per_tap):
  """One (batch item, H_out tile, C_out tile) grid step.

  x_ref  : [1, h_tile+1, w_out+1, 4*c_in]  parity planes (lane-merged), +1 halo
  w_ref  : [9*c_in, TCO]                   im2col-ordered weights (bf16)
  b_ref  : [1, TCO]                        bias (f32)
  m_ref  : [1, h_tile, 1]                  (1 - out_padding) validity mask (f32)
  out_ref: [1, h_tile, w_out, TCO]         NHWC output tile
  """
  x = x_ref[0]                             # [h_tile+1, w_out+1, 4*c_in]
  tco = w_ref.shape[-1]

  def tap(kh, kw):
    # tap (kh,kw) at output (ho,wo) reads padded row 2*ho+kh, col 2*wo+kw
    # == parity plane (kh&1, kw&1) at (ho + kh//2, wo + kw//2).
    p = 2 * (kh % 2) + (kw % 2)
    dh, dw = kh // 2, kw // 2
    return x[dh:dh + h_tile, dw:dw + w_out, p * c_in:(p + 1) * c_in]

  if per_tap:
    # Large c_in: accumulate 9 tap matmuls in f32 — no 9x materialized patches.
    acc = jnp.zeros((h_tile * w_out, tco), jnp.float32)
    for kh in range(3):
      for kw in range(3):
        t = kh * 3 + kw
        lhs = tap(kh, kw).reshape(h_tile * w_out, c_in)
        acc = acc + jnp.dot(lhs, w_ref[t * c_in:(t + 1) * c_in, :],
                            preferred_element_type=jnp.float32)
  else:
    # Small c_in: concat taps so the single matmul has contraction K = 9*c_in.
    parts = [tap(kh, kw) for kh in range(3) for kw in range(3)]
    patches = jnp.concatenate(parts, axis=-1).reshape(h_tile * w_out, 9 * c_in)
    acc = jnp.dot(patches, w_ref[...], preferred_element_type=jnp.float32)

  acc = acc + b_ref[...]                                 # broadcast over rows
  act = jnp.tanh(acc) if use_tanh else jnp.maximum(acc, 0.0)
  act = act.reshape(h_tile, w_out, tco)

  m = m_ref[0]                                           # [h_tile, 1]
  out_ref[0] = (act * m[:, :, None]).astype(out_ref.dtype)


def conv2d_subsampling_nhwc(x, paddings, kernel, bias, *,
                            filter_stride=(2, 2), padding='SAME',
                            use_tanh=False, cout_tile=256, h_tile_max=128,
                            compute_dtype=jnp.bfloat16,
                            out_dtype=jnp.float32):
  """NHWC core: x [B,H,W,C_in], paddings [B,H], kernel [C_out,C_in,3,3]."""
  B, H, W, c_in = x.shape
  c_out, c_in_k, kh_, kw_ = kernel.shape
  assert (kh_, kw_) == (3, 3) and c_in_k == c_in
  # TODO(synk): only the default stride (2, 2) and padding='SAME' implemented.
  assert tuple(filter_stride) == (2, 2) and padding == 'SAME'
  assert paddings.shape == (B, H)

  h_out, w_out = -(-H // 2), -(-W // 2)
  pad_t, _ = _same_pads(H, 2)
  pad_l, _ = _same_pads(W, 2)
  tgt_h, tgt_w = 2 * (h_out + 1), 2 * (w_out + 1)
  h_half, w_half = h_out + 1, w_out + 1

  # ---- wrapper-side layout plumbing (bf16 cast, pad, parity split, halo) ----
  xp = jnp.pad(x.astype(compute_dtype),
               ((0, 0), (pad_t, tgt_h - H - pad_t),
                (pad_l, tgt_w - W - pad_l), (0, 0)))
  # Merge the 4 parity planes into the lane axis: [..., (2*pr+pc)*c_in + c].
  x_par = (xp.reshape(B, h_half, 2, w_half, 2, c_in)
             .transpose(0, 1, 3, 2, 4, 5)
             .reshape(B, h_half, w_half, 4 * c_in))

  h_tile = _pick_h_tile(h_out, h_tile_max)
  n_ht = h_out // h_tile
  # Each H tile carries its own +1 halo row (duplicated by a cheap row gather).
  row_idx = jnp.arange(n_ht)[:, None] * h_tile + jnp.arange(h_tile + 1)[None, :]
  x_tiles = jnp.take(x_par, row_idx, axis=1)       # [B, n_ht, h_tile+1, w_half, 4*c_in]
  x_tiles = x_tiles.reshape(B * n_ht, h_tile + 1, w_half, 4 * c_in)

  # im2col-ordered weights [(kh*3+kw)*c_in + c, o] (bf16) and f32 2-D bias.
  w_flat = (jnp.transpose(kernel, (2, 3, 1, 0)).reshape(9 * c_in, c_out)
            .astype(compute_dtype))
  bias2d = bias.reshape(1, c_out).astype(jnp.float32)

  # out_padding = the module's stride-2, 1-tap conv1d over zero-extended paddings.
  out_padding = paddings[:, ::2].astype(jnp.float32)        # [B, h_out]
  mask = (1.0 - out_padding)[:, :, None]                    # [B, h_out, 1]

  tco = cout_tile if (c_out % cout_tile == 0) else c_out
  n_co = c_out // tco
  per_tap = c_in >= 128     # tap-accumulated matmuls for the large-channel layer

  kern = functools.partial(_conv_subsample_kernel, h_tile=h_tile, w_out=w_out,
                           c_in=c_in, use_tanh=use_tanh, per_tap=per_tap)

  out = pl.pallas_call(
      kern,
      out_shape=jax.ShapeDtypeStruct((B, h_out, w_out, c_out), out_dtype),
      grid=(B, n_ht, n_co),          # C_out innermost: input block stays resident
      in_specs=[
          pl.BlockSpec((1, h_tile + 1, w_half, 4 * c_in),
                       lambda b, h, j: (b * n_ht + h, 0, 0, 0)),
          pl.BlockSpec((9 * c_in, tco), lambda b, h, j: (0, j)),
          pl.BlockSpec((1, tco), lambda b, h, j: (0, j)),
          pl.BlockSpec((1, h_tile, 1), lambda b, h, j: (b, h, 0)),
      ],
      out_specs=pl.BlockSpec((1, h_tile, w_out, tco),
                             lambda b, h, j: (b, h, 0, j)),
      compiler_params=pltpu.CompilerParams(
          dimension_semantics=("parallel", "parallel", "arbitrary"),
          vmem_limit_bytes=64 * 1024 * 1024),
  )(x_tiles, w_flat, bias2d, mask)

  return out, out_padding


def conv2d_subsampling(inputs, paddings, kernel, bias, *, input_channels,
                       **kwargs):
  """PyTorch-module-compatible NCHW wrapper.

  inputs [B, C_in, H, W], paddings [B, H], kernel [C_out, C_in, 3, 3], bias [C_out].
  Returns (outputs [B, C_out, H_out, W_out], out_padding [B, H_out]).
  NOTE: for chained subsample layers prefer conv2d_subsampling_nhwc to avoid
  the NCHW<->NHWC transposes (they are a full extra HBM pass each).
  """
  B, c_in_total, H, W = inputs.shape
  groups = c_in_total // input_channels
  # TODO(synk): grouped conv (groups > 1) not implemented (workload uses 1).
  assert groups == 1 and c_in_total == input_channels
  x_nhwc = jnp.transpose(inputs, (0, 2, 3, 1))
  out_nhwc, out_padding = conv2d_subsampling_nhwc(x_nhwc, paddings, kernel,
                                                  bias, **kwargs)
  return jnp.transpose(out_nhwc, (0, 3, 1, 2)), out_padding


def init_params(key, input_channels, output_channels):
  """Xavier-uniform 3x3 kernel (as in the module) and zero bias."""
  fan_in = input_channels * 9
  fan_out = output_channels * 9
  a = (6.0 / (fan_in + fan_out)) ** 0.5
  kernel = jax.random.uniform(key, (output_channels, input_channels, 3, 3),
                              jnp.float32, -a, a)
  bias = jnp.zeros((output_channels,), jnp.float32)
  return kernel, bias


def reference_forward(inputs, paddings, kernel, bias, use_tanh,
                      compute_dtype=jnp.bfloat16):
  """Pure-JAX reference with identical semantics (bf16-cast operands)."""
  _, _, H, W = inputs.shape
  pt, pb = _same_pads(H, 2)
  pleft, pright = _same_pads(W, 2)
  x = inputs.astype(compute_dtype).astype(jnp.float32)
  w = kernel.astype(compute_dtype).astype(jnp.float32)
  out = lax.conv_general_dilated(
      x, w, window_strides=(2, 2),
      padding=((pt, pb), (pleft, pright)),
      dimension_numbers=('NCHW', 'OIHW', 'NCHW'),
      precision=lax.Precision.HIGHEST)
  out = out + bias[None, :, None, None]
  out = jnp.tanh(out) if use_tanh else jnp.maximum(out, 0.0)
  out_padding = paddings[:, ::2]
  out = out * (1.0 - out_padding)[:, None, :, None]
  return out, out_padding


if __name__ == "__main__":
  key = jax.random.PRNGKey(0)
  kx, kw, kb = jax.random.split(key, 3)

  # Small shapes: batch=2, channels=4, time=16, freq=16, out_channels=32.
  B, C_IN, H, W = 2, 4, 16, 16
  C_OUT = 32
  x = jax.random.normal(kx, (B, C_IN, H, W), jnp.float32)
  # sequence 0: no padding; sequence 1: last 6 time frames padded.
  paddings = jnp.array([[0.0] * 16,
                        [0.0] * 10 + [1.0] * 6], jnp.float32)
  kernel, bias = init_params(kw, C_IN, C_OUT)
  # nonzero bias to exercise the bias-add path (module inits zeros).
  bias = 0.05 * jax.random.normal(kb, (C_OUT,), jnp.float32)

  out, out_pad = conv2d_subsampling(x, paddings, kernel, bias,
                                    input_channels=C_IN)
  out = jax.block_until_ready(out)

  ref_out, ref_pad = reference_forward(x, paddings, kernel, bias, use_tanh=False)
  assert out.shape == (B, C_OUT, 8, 8), out.shape
  assert out_pad.shape == (B, 8), out_pad.shape
  assert jnp.allclose(out_pad, ref_pad), "out_padding mismatch"
  max_err = float(jnp.max(jnp.abs(out - ref_out)))
  assert jnp.allclose(out, ref_out, atol=2e-3, rtol=2e-3), max_err
  print("KERNEL_OK")
</pallas_src>

<mosaic_0001>
module attributes {stable_mosaic.version = 11 : i64} {
  func.func @_conv_subsample_kernel(%arg0: i32, %arg1: i32, %arg2: i32, %arg3: memref<1x9x9x16xbf16, #tpu.memory_space<vmem>>, %arg4: memref<36x32xbf16, #tpu.memory_space<vmem>>, %arg5: memref<1x32xf32, #tpu.memory_space<vmem>>, %arg6: memref<1x8x1xf32, #tpu.memory_space<vmem>>, %arg7: memref<1x8x8x32xf32, #tpu.memory_space<vmem>>) attributes {dimension_semantics = [#tpu.dimension_semantics<parallel>, #tpu.dimension_semantics<parallel>, #tpu.dimension_semantics<arbitrary>], iteration_bounds = array<i64: 2, 1, 1>, scalar_prefetch = 0 : i64, scratch_operands = 0 : i64, tpu.core_type = #tpu.core_type<tc>, window_params = [{transform_indices = @transform_0, window_bounds = array<i64: 1, 9, 9, 16>}, {transform_indices = @transform_1, window_bounds = array<i64: 36, 32>}, {transform_indices = @transform_2, window_bounds = array<i64: 1, 32>}, {transform_indices = @transform_3, window_bounds = array<i64: 1, 8, 1>}, {transform_indices = @transform_4, window_bounds = array<i64: 1, 8, 8, 32>}]} {
    %c0 = arith.constant 0 : index
    %c0_0 = arith.constant 0 : index
    %c0_1 = arith.constant 0 : index
    %c0_2 = arith.constant 0 : index
    %0 = vector.load %arg3[%c0, %c0_0, %c0_1, %c0_2] : memref<1x9x9x16xbf16, #tpu.memory_space<vmem>>, vector<1x9x9x16xbf16>
    %1 = vector.shape_cast %0 : vector<1x9x9x16xbf16> to vector<9x9x16xbf16>
    %2 = vector.extract_strided_slice %1 {offsets = [0, 0, 0], sizes = [8, 8, 4], strides = [1, 1, 1]} : vector<9x9x16xbf16> to vector<8x8x4xbf16>
    %3 = vector.extract_strided_slice %1 {offsets = [0, 0, 4], sizes = [8, 8, 4], strides = [1, 1, 1]} : vector<9x9x16xbf16> to vector<8x8x4xbf16>
    %4 = vector.extract_strided_slice %1 {offsets = [0, 1, 0], sizes = [8, 8, 4], strides = [1, 1, 1]} : vector<9x9x16xbf16> to vector<8x8x4xbf16>
    %5 = vector.extract_strided_slice %1 {offsets = [0, 0, 8], sizes = [8, 8, 4], strides = [1, 1, 1]} : vector<9x9x16xbf16> to vector<8x8x4xbf16>
    %6 = vector.extract_strided_slice %1 {offsets = [0, 0, 12], sizes = [8, 8, 4], strides = [1, 1, 1]} : vector<9x9x16xbf16> to vector<8x8x4xbf16>
    %7 = vector.extract_strided_slice %1 {offsets = [0, 1, 8], sizes = [8, 8, 4], strides = [1, 1, 1]} : vector<9x9x16xbf16> to vector<8x8x4xbf16>
    %8 = vector.extract_strided_slice %1 {offsets = [1, 0, 0], sizes = [8, 8, 4], strides = [1, 1, 1]} : vector<9x9x16xbf16> to vector<8x8x4xbf16>
    %9 = vector.extract_strided_slice %1 {offsets = [1, 0, 4], sizes = [8, 8, 4], strides = [1, 1, 1]} : vector<9x9x16xbf16> to vector<8x8x4xbf16>
    %10 = vector.extract_strided_slice %1 {offsets = [1, 1, 0], sizes = [8, 8, 4], strides = [1, 1, 1]} : vector<9x9x16xbf16> to vector<8x8x4xbf16>
    %11 = tpu.concatenate %2, %3, %4, %5, %6, %7, %8, %9, %10 in 2 : vector<8x8x4xbf16>, vector<8x8x4xbf16>, vector<8x8x4xbf16>, vector<8x8x4xbf16>, vector<8x8x4xbf16>, vector<8x8x4xbf16>, vector<8x8x4xbf16>, vector<8x8x4xbf16>, vector<8x8x4xbf16> -> vector<8x8x36xbf16>
    %12 = vector.shape_cast %11 : vector<8x8x36xbf16> to vector<64x36xbf16>
    %c0_3 = arith.constant 0 : index
    %c0_4 = arith.constant 0 : index
    %13 = vector.load %arg4[%c0_3, %c0_4] : memref<36x32xbf16, #tpu.memory_space<vmem>>, vector<36x32xbf16>
    %cst = arith.constant dense<0.000000e+00> : vector<64x32xf32>
    %14 = tpu.matmul %12, %13, %cst {dimension_numbers = #tpu.dot_dimension_numbers<[1], [0], [0], [1], [0, 0, 1, 1], [], []>} : vector<64x36xbf16>, vector<36x32xbf16>, vector<64x32xf32> -> vector<64x32xf32>
    %c0_5 = arith.constant 0 : index
    %c0_6 = arith.constant 0 : index
    %15 = vector.load %arg5[%c0_5, %c0_6] : memref<1x32xf32, #tpu.memory_space<vmem>>, vector<1x32xf32>
    %16 = vector.broadcast %15 : vector<1x32xf32> to vector<64x32xf32>
    %17 = arith.addf %14, %16 : vector<64x32xf32>
    %cst_7 = arith.constant 0.000000e+00 : f32
    %18 = vector.broadcast %cst_7 : f32 to vector<64x32xf32>
    %19 = arith.maximumf %17, %18 : vector<64x32xf32>
    %20 = vector.shape_cast %19 : vector<64x32xf32> to vector<8x8x32xf32>
    %c0_8 = arith.constant 0 : index
    %c0_9 = arith.constant 0 : index
    %c0_10 = arith.constant 0 : index
    %21 = vector.load %arg6[%c0_8, %c0_9, %c0_10] : memref<1x8x1xf32, #tpu.memory_space<vmem>>, vector<1x8x1xf32>
    %22 = vector.shape_cast %21 : vector<1x8x1xf32> to vector<8x1xf32>
    %23 = vector.shape_cast %22 : vector<8x1xf32> to vector<8x1x1xf32>
    %24 = vector.broadcast %23 : vector<8x1x1xf32> to vector<8x8x32xf32>
    %25 = arith.mulf %20, %24 : vector<8x8x32xf32>
    %c0_11 = arith.constant 0 : index
    %c0_12 = arith.constant 0 : index
    %c0_13 = arith.constant 0 : index
    %c0_14 = arith.constant 0 : index
    %26 = vector.load %arg7[%c0_11, %c0_12, %c0_13, %c0_14] : memref<1x8x8x32xf32, #tpu.memory_space<vmem>>, vector<1x8x8x32xf32>
    %27 = vector.shape_cast %26 : vector<1x8x8x32xf32> to vector<8x8x32xf32>
    %28 = vector.shape_cast %25 : vector<8x8x32xf32> to vector<1x8x8x32xf32>
    tpu.vector_store %arg7[%c0_11, %c0_12, %c0_13, %c0_14], %28 {strides = array<i32>} : memref<1x8x8x32xf32, #tpu.memory_space<vmem>>, vector<1x8x8x32xf32>,
    return
  }
  func.func @transform_0(%arg0: i32, %arg1: i32, %arg2: i32) -> (i32, i32, i32, i32) {
    %c1_i32 = arith.constant 1 : i32
    %0 = arith.muli %arg0, %c1_i32 : i32
    %1 = arith.addi %0, %arg1 : i32
    %c0_i32 = arith.constant 0 : i32
    %c0_i32_0 = arith.constant 0 : i32
    %c0_i32_1 = arith.constant 0 : i32
    %c0_i32_2 = arith.constant 0 : i32
    return %1, %c0_i32, %c0_i32_0, %c0_i32_1 : i32, i32, i32, i32
  }
  func.func @transform_1(%arg0: i32, %arg1: i32, %arg2: i32) -> (i32, i32) {
    %c0_i32 = arith.constant 0 : i32
    %c0_i32_0 = arith.constant 0 : i32
    return %c0_i32, %arg2 : i32, i32
  }
  func.func @transform_2(%arg0: i32, %arg1: i32, %arg2: i32) -> (i32, i32) {
    %c0_i32 = arith.constant 0 : i32
    %c0_i32_0 = arith.constant 0 : i32
    return %c0_i32, %arg2 : i32, i32
  }
  func.func @transform_3(%arg0: i32, %arg1: i32, %arg2: i32) -> (i32, i32, i32) {
    %c0_i32 = arith.constant 0 : i32
    %c0_i32_0 = arith.constant 0 : i32
    return %arg0, %arg1, %c0_i32 : i32, i32, i32
  }
  func.func @transform_4(%arg0: i32, %arg1: i32, %arg2: i32) -> (i32, i32, i32, i32) {
    %c0_i32 = arith.constant 0 : i32
    %c0_i32_0 = arith.constant 0 : i32
    return %arg0, %arg1, %c0_i32, %arg2 : i32, i32, i32, i32
  }
}

</mosaic_0001>

<bundles_post_ra>
// kernel: tpu_custom_call.1
= control target key start
LH: loop header
LB: loop body
LE: loop exit
PB: predicated region body
PF: predicated region fallthrough
CT: control target
= control target key end

     0   :  { %s2038_s0 = inlined_call_operand.hbm [shape: bf16[2,9,9,16], index: 0, kind: input, shape index: {}]   ;;  %s2039_s1 = inlined_call_operand.hbm [shape: bf16[36,32], index: 1, kind: input, shape index: {}]   ;;  %s2040_s2 = inlined_call_operand.hbm [shape: f32[1,32], index: 2, kind: input, shape index: {}]   ;;  %s2041_s3 = inlined_call_operand.hbm [shape: f32[2,8,1], index: 3, kind: input, shape index: {}]   ;;  %s2042_s4 = inlined_call_operand.hbm [shape: f32[2,8,8,32], index: 4, kind: output, shape index: {}]  }
   0x1   :  { %2049 = sst [smem:[#allocation15_spill]] %s2038_s0 }
   0x2   :  { %2050 = sst [smem:[#allocation16_spill]] %s2039_s1 }
   0x3   :  { %2051 = sst [smem:[#allocation17_spill]] %s2040_s2 }
   0x4   :  { %9 = vsyncpa [#allocation3], 0 }
   0x5   :  { %11 = vsyncpa [#allocation3 + $0x1], 0 }
   0x6   :  { %12 = vsyncpa [#allocation6], 0 }
   0x7   :  { %13 = vsyncpa [#allocation9], 0 }
   0x8   :  { %15 = vsyncpa [#allocation9 + $0x1], 0 }
   0x9   :  { %16 = vsyncpa [#allocation4], 0 }
   0xa   :  { %18 = vsyncpa [#allocation4 + $0x1], 0  ;;  %s1525_s15 = smov 0   ;;  %s1527_s16 = smov 0  }
   0xb   :  { %s1529_s17 = smov 0   ;;  %s1531_s18 = smov 0  }
   0xc   :  { %s1533_s19 = smov 0   ;;  %s1535_s20 = smov 0  }
   0xd LB: > { %s1073_s21 = sadd.s32 4294967295, %s1483_s20   ;;  %s1074_s22 = sadd.s32 4294967294, %s1483_s20   ;;  %s1483_s20 = sphi %s1535_s20, %s24_s20   ;;  %s1479_s19 = sphi %s1533_s19, %s2077_s19   ;;  %s1475_s18 = sphi %s1531_s18, %s2076_s18   ;;  %s1471_s17 = sphi %s1529_s17, %s2075_s17   ;;  %s1467_s16 = sphi %s1527_s16, %s2074_s16   ;;  %s1463_s15 = sphi %s1525_s15, %s2073_s15  }
   0xe   : > { %p59_p0 = scmp.ne.s32.totalorder %s1471_s17, %s1467_s16  ;;  %p60_p1 = scmp.eq.s32.totalorder %s1483_s20, 0 }
   0xf   : > { %p65_p2 = scmp.ne.s32.totalorder %s1467_s16, %s1463_s15  ;;  %p1563_p3 = scmp.eq.s32.totalorder %s1073_s21, 0 }
  0x10   : > { %p173_p4 = scmp.eq.s32.totalorder %s1073_s21, 1  ;;  %p1567_p5 = por %p60_p1, %p59_p0 }
  0x11   : > { %s2052_s24 = scalar_select %p1563_p3, 1, 0 }
  0x12   : > { %p179_p6 = scmp.eq.s32.totalorder %s1074_s22, 1  ;;  %p1573_p7 = por %p1563_p3, %p65_p2 }
  0x13   : > { %p1577_p8 = por %p173_p4, %p59_p0  ;;  %p1075_p10 = scmp.ge.s32.totalorder %s1483_s20, 1 }
  0x14   : > { %s2054_s26 = scalar_select %p1573_p7, 1, 0 }
  0x15   : > { %s2055_s27 = scalar_select %p1577_p8, 1, 0 }
  0x16   : > { %p1581_p9 = por %p179_p6, %p65_p2  ;;  %p186_p11 = scmp.lt.s32.totalorder %s1483_s20, 3 }
  0x17   : > { %s1485_s30 = smov [#allocation5]   ;;  %s1486_s7 = smov [#allocation7]  }
  0x18   : > { %s2056_s28 = scalar_select %p1581_p9, 1, 0 }
  0x19   : > { %p1587_p12 = pnand %p1075_p10, %p186_p11  ;;  %s200_s5 = sshll.u32 %s1485_s30, 4  ;;  %s1591_s5 = int_to_ptr.vmem [resolvable:$true] %s200_s5 }
  0x1a   : > { %s216_s8 = sshll.u32 %s1486_s7, 4  ;;  %s2059_s1 = sld [smem:[#allocation16_spill]]  ;;  %s1602_s8 = int_to_ptr.vmem [resolvable:$true] %s216_s8 }
  0x1b   : > { %s2057_s29 = scalar_select %p1587_p12, 1, 0 }
  0x1c   : > { %p1169_p13 = pneg %p1587_p12 }
  0x1e   : > { %p1598_p1 = pnand %p1169_p13, %p1563_p3 }
  0x20   : > { %s1277_s12 = scalar_lea.hbm %s2059_s1, 320  ;;  %p1279_p4 = pneg %p1598_p1 }
  0x21   : > { %p1278_p2 = scmp.ne.s32.totalorder %s2059_s1, %s1277_s12  ;;  %p1284_p11 = scmp.lt.u32.totalorder %s1277_s12, %s2059_s1 }
  0x23   : > { %p1280_p6 = pnand %p1279_p4, %p1278_p2 }
  0x25   : > { %p1281_p10 = pneg %p1280_p6 }
  0x27   : > { %p1286_p13 = pnand %p1284_p11, %p1281_p10 }
  0x29   : > { %1289 = shalt.err (!%p1286_p13)
}
  0x2a   : > { %s1290_s30 = scalar_lea.vmem %s1591_s5, 320  ;;  %p1298_p3 = scmp.lt.s32.totalorder %s1591_s5, %s1591_s5 }
  0x2b   : > { %p1291_p0 = scmp.ne.s32.totalorder %s1591_s5, %s1290_s30  ;;  %p1299_p2 = scmp.lt.s32.totalorder %s1290_s30, %s1290_s30 }
  0x2d   : > { %p1293_p9 = pnand %p1291_p0, %p1279_p4  ;;  %p1300_p6 = por %p1299_p2, %p1298_p3 }
  0x2f   : > { %p1294_p8 = pneg %p1293_p9 }
  0x31   : > { %p1301_p7 = pnand %p1300_p6, %p1294_p8 }
  0x33   : > { %1304 = shalt.err (!%p1301_p7)
}
  0x34   : > { %s2047_s7 = smov 64   ;;  %s1488_s10 = smov 4  }
  0x35   : > { %1172 = dma.hbm_to_vmem [thread:$0]  (!%p1598_p1), %s2059_s1, 320, %s1591_s5, [#allocation6], %s2047_s7, %s2047_s7, %s1488_s10  }
  0x36   : > { %s2060_s2 = sld [smem:[#allocation17_spill]] }
  0x3c   : > { %s1305_s21 = scalar_lea.hbm %s2060_s2, 16 }
  0x3d   : > { %p1306_p3 = scmp.ne.s32.totalorder %s2060_s2, %s1305_s21  ;;  %p1312_p9 = scmp.lt.u32.totalorder %s1305_s21, %s2060_s2 }
  0x3f   : > { %p1308_p7 = pnand %p1306_p3, %p1279_p4 }
  0x41   : > { %p1309_p8 = pneg %p1308_p7 }
  0x43   : > { %p1314_p0 = pnand %p1312_p9, %p1309_p8 }
  0x45   : > { %1317 = shalt.err (!%p1314_p0)
}
  0x46   : > { %s1318_s5 = scalar_lea.vmem %s1602_s8, 16  ;;  %s1325_s11 = scalar_lea.vmem %s1602_s8, 32 }
  0x47   : > { %p1319_p10 = scmp.ne.s32.totalorder %s1602_s8, %s1318_s5  ;;  %p1326_p2 = scmp.lt.s32.totalorder %s1602_s8, %s1602_s8 }
  0x48   : > { %p1327_p6 = scmp.lt.s32.totalorder %s1325_s11, %s1318_s5 }
  0x49   : > { %p1321_p11 = pnand %p1319_p10, %p1279_p4 }
  0x4a   : > { %p1328_p3 = por %p1327_p6, %p1326_p2 }
  0x4b   : > { %p1322_p13 = pneg %p1321_p11 }
  0x4d   : > { %p1329_p7 = pnand %p1328_p3, %p1322_p13 }
  0x4f   : > { %1332 = shalt.err (!%p1329_p7)
}
  0x50   : > { %1175 = dma.hbm_to_vmem [thread:$0]  (!%p1598_p1), %s2060_s2, 16, %s1602_s8, [#allocation6]  }
  0x51   : > { %s2061_s12 = sadd.s32 1, %s1479_s19  ;;  %p1189_p8 = scmp.lt.s32.totalorder %s1483_s20, 2 }
  0x52   : > { %p45_p4 = scmp.ge.s32.totalorder %s2061_s12, 2  ;;  %s1665_s13 = sand.u32 1, %s1471_s17  }
  0x53   : > { %s1153_s6 = smul.u32 1152, %s1479_s19  ;;  %s2062_s14 = smov %s2061_s12 }
  0x54   : > { %s2079_s14 = smov (%p45_p4, %s2062_s14), 0  ;;  %s1152_s21 = smul.u32 72, %s1665_s13 }
  0x55   : > { %s49_s22 = ssub.s32 %s1479_s19, %s2079_s14  ;;  %s2063_s0 = sld [smem:[#allocation15_spill]] }
  0x56   : > { %p50_p1 = scmp.eq.s32.totalorder %s49_s22, 0  ;;  %s231_s8 = scalar_lea.vmem [#allocation2], %s1152_s21 }
  0x57   : > { %s239_s23 = sshll.u32 %s231_s8, 4  ;;  %p1682_p9 = pnand %p1189_p8, %p1567_p5  ;;  %s1691_s23 = int_to_ptr.vmem [resolvable:$true] %s239_s23 }
  0x58   : > { %s2065_s12 = sadd.s32 1, %s1471_s17 }
  0x59   : > { %s1689_s7 = scalar_select %p50_p1, %s1471_s17, %s2065_s12  }
  0x5a   : > { %p1335_p10 = pneg %p1682_p9 }
  0x5b   : > { %s1678_s11 = scalar_lea.hbm %s2063_s0, %s1153_s6  ;;  %s228_s6 = scalar_lea.sflag [#allocation3], %s1665_s13 }
  0x5c   : > { %s1333_s30 = scalar_lea.hbm %s1678_s11, 1152  ;;  %s1338_s22 = scalar_lea.hbm %s2063_s0, 2304 }
  0x5d   : > { %p1334_p0 = scmp.ne.s32.totalorder %s1678_s11, %s1333_s30  ;;  %p1339_p5 = scmp.lt.u32.totalorder %s1678_s11, %s2063_s0 }
  0x5e   : > { %p1340_p2 = scmp.lt.u32.totalorder %s1338_s22, %s1333_s30  ;;  %p1342_p3 = scmp.lt.u32.totalorder %s1333_s30, %s1678_s11 }
  0x5f   : > { %p1336_p11 = pnand %p1335_p10, %p1334_p0 }
  0x60   : > { %p1341_p6 = por %p1340_p2, %p1339_p5 }
  0x61   : > { %p1337_p13 = pneg %p1336_p11 }
  0x62   : > { %p1343_p7 = por %p1342_p3, %p1341_p6 }
  0x64   : > { %p1344_p4 = pnand %p1343_p7, %p1337_p13 }
  0x66   : > { %1347 = shalt.err (!%p1344_p4)
}
  0x67   : > { %s1348_s12 = scalar_lea.vmem %s1691_s23, 1152  ;;  %s1489_s25 = smov [#allocation2]  }
  0x68   : > { %p1349_p8 = scmp.ne.s32.totalorder %s1691_s23, %s1348_s12  ;;  %s1353_s21 = sshll.u32 %s1489_s25, 4  ;;  %s1354_s21 = int_to_ptr.vmem [resolvable:$false] %s1353_s21 }
  0x69   : > { %s1355_s5 = scalar_lea.vmem %s1354_s21, 2304  ;;  %p1356_p11 = scmp.lt.s32.totalorder %s1691_s23, %s1354_s21 }
  0x6a   : > { %p1351_p1 = pnand %p1349_p8, %p1335_p10  ;;  %p1357_p5 = scmp.lt.s32.totalorder %s1355_s5, %s1348_s12 }
  0x6c   : > { %p1352_p0 = pneg %p1351_p1  ;;  %p1358_p2 = por %p1357_p5, %p1356_p11 }
  0x6e   : > { %p1359_p6 = pnand %p1358_p2, %p1352_p0 }
  0x70   : > { %1362 = shalt.err (!%p1359_p6)
}
  0x71   : > { %s2066_s30 = smov 64   ;;  %s1080_s22 = sshll.u32 %s1665_s13, 3 }
  0x72   : > { %1179 = dma.hbm_to_vmem [thread:$0]  (!%p1682_p9), %s1678_s11, 1152, %s1691_s23, %s228_s6, %s2066_s30, %s2066_s30, %s1488_s10  }
  0x73   : > { %s1081_s8 = sshll.u32 %s1479_s19, 7  ;;  %s253_s5 = scalar_lea.vmem [#allocation8], %s1080_s22 }
  0x74   : > { %s1729_s21 = scalar_lea.hbm %s2041_s3, %s1081_s8  ;;  %s261_s0 = sshll.u32 %s253_s5, 4  ;;  %s262_s0 = int_to_ptr.vmem [resolvable:$true] %s261_s0 }
  0x75   : > { %s250_s1 = scalar_lea.sflag [#allocation9], %s1665_s13  ;;  %s1363_s2 = scalar_lea.hbm %s1729_s21, 128 }
  0x76   : > { %p1364_p13 = scmp.ne.s32.totalorder %s1729_s21, %s1363_s2  ;;  %s1368_s23 = scalar_lea.hbm %s2041_s3, 256 }
  0x77   : > { %p1369_p4 = scmp.lt.u32.totalorder %s1729_s21, %s2041_s3  ;;  %p1370_p8 = scmp.lt.u32.totalorder %s1368_s23, %s1363_s2 }
  0x78   : > { %p1366_p3 = pnand %p1364_p13, %p1335_p10  ;;  %p1372_p0 = scmp.lt.u32.totalorder %s1363_s2, %s1729_s21 }
  0x79   : > { %p1371_p1 = por %p1370_p8, %p1369_p4 }
  0x7a   : > { %p1367_p7 = pneg %p1366_p3 }
  0x7b   : > { %p1373_p11 = por %p1372_p0, %p1371_p1 }
  0x7d   : > { %p1374_p5 = pnand %p1373_p11, %p1367_p7 }
  0x7f   : > { %1377 = shalt.err (!%p1374_p5)
}
  0x80   : > { %s1378_s13 = scalar_lea.vmem %s262_s0, 128  ;;  %s1490_s22 = smov [#allocation8]  }
  0x81   : > { %p1379_p2 = scmp.ne.s32.totalorder %s262_s0, %s1378_s13  ;;  %s1383_s8 = sshll.u32 %s1490_s22, 4  ;;  %s1384_s8 = int_to_ptr.vmem [resolvable:$false] %s1383_s8 }
  0x82   : > { %s1385_s12 = scalar_lea.vmem %s1384_s8, 256  ;;  %p1386_p3 = scmp.lt.s32.totalorder %s262_s0, %s1384_s8 }
  0x83   : > { %p1381_p6 = pnand %p1379_p2, %p1335_p10  ;;  %p1387_p12 = scmp.lt.s32.totalorder %s1385_s12, %s1378_s13 }
  0x85   : > { %p1382_p13 = pneg %p1381_p6  ;;  %p1388_p4 = por %p1387_p12, %p1386_p3 }
  0x87   : > { %p1389_p8 = pnand %p1388_p4, %p1382_p13 }
  0x89   : > { %1392 = shalt.err (!%p1389_p8)
}
  0x8a   : > { %1182 = dma.hbm_to_vmem [thread:$0]  (!%p1682_p9), %s1729_s21, 128, %s262_s0, %s250_s1  }
  0x8b   : > { %p2067_p7 = scmp.ne.s32.totalorder %s2057_s29, 0 }
  0x8c   : > { %s1754_s2 = sand.u32 (!%p2067_p7), 1, %s1467_s16   ;;  %p2068_p12 = scmp.ne.s32.totalorder (!%p2067_p7), %s2054_s26, 0 }
  0x8d   : > { %270 = sbr.rel (%p2067_p7) target bundleno = 592 (0x250), region = 36  ;;  %s273_s5 = scalar_lea.sflag (!%p2067_p7), [#allocation3], %s1754_s2 }
  0x8e   : > { %s1154_s25 = smul.u32 (!%p2067_p7), 72, %s1754_s2 }
  0x90   : > { %s1758_s10 = scalar_lea.vmem (!%p2067_p7), [#allocation2], %s1154_s25 }
  0x94   : > { %1446 = dma.done.wait (%p2068_p12), %s273_s5, 1152  }
  0x95   : > { %1448 = vsyncadd (%p2068_p12), %s273_s5, 4294966144  ;;  %p2069_p9 = scmp.ne.s32.totalorder %s2052_s24, 0 }
  0x97   : > { %1450 = dma.done.wait (%p2069_p9), [#allocation6], 336  }
  0x98   : > { %1452 = vsyncadd (%p2069_p9), [#allocation6], 4294966960  ;;  %s1085_s0 = sshll.u32 %s1754_s2, 3  ;;  %s290_s1 = scalar_lea.sflag [#allocation9], %s1754_s2 }
  0x99   : > { %s1770_s29 = scalar_lea.vmem [#allocation8], %s1085_s0 }
  0x9a   : > { %1454 = dma.done.wait (%p2068_p12), %s290_s1, 128  }
  0x9b   : > { %1456 = vsyncadd (%p2068_p12), %s290_s1, 4294967168  ;;  %v1777_v0 = vld [vmem:[%s1758_s10 + $0x8] sm:$0xf]  ;;  %v329_v1 = vld [vmem:[%s1758_s10 + $0xc] sm:$0x1]  ;;  %s1491_s24 = smov 4  }
  0x9c   : > { %v1781_v2 = vld [vmem:[%s1758_s10] sm:$0xf]  ;;  %v1785_v3 = vcombine.low %v1777_v0, %v1777_v0  ;;  %v1088_v4 = vcombine.low %v1777_v0, %v329_v1  ;;  %v327_v5 = vld [vmem:[%s1758_s10 + $0x4] sm:$0x1]  ;;  %v1798_v11 = vld [vmem:[%s1758_s10 + $0x28] sm:$0xf] }
  0x9d   : > { %v1095_v6 = vcombine.low %v1781_v2, %v1781_v2  ;;  %v1792_v7 = vld [vmem:[%s1758_s10 + $0x20] sm:$0xf]  ;;  %v335_v8 = vld [vmem:[%s1758_s10 + $0x24] sm:$0x1]  ;;  %v1087_v9 = vcombine.low %v1781_v2, %v327_v5  ;;  %v337_v12 = vld [vmem:[%s1758_s10 + $0x2c] sm:$0x1]  ;;  %v1100_v58 = vcombine.low %v1798_v11, %v1798_v11 }
  0x9e   : > { %v1091_v10 = vcombine.low %v1792_v7, %v335_v8  ;;  %v1802_v13 = vld [vmem:[%s1758_s10 + $0x18] sm:$0xf]  ;;  %466 = vrot.lane.b32.xlu1 %v1785_v3, %s1491_s24  ;;  %v1092_v14 = vcombine.low %v1798_v11, %v337_v12  ;;  %v392_v15 = vshrl.u32 %v1088_v4, 16  ;;  %v394_v16 = vshll.u32 %v1088_v4, 16  ;;  %v333_v17 = vld [vmem:[%s1758_s10 + $0x1c] sm:$0x1] }
  0x9f   : > { %464 = vrot.lane.b32.xlu0 %v1095_v6, %s1491_s24  ;;  %v1810_v18 = vld [vmem:[%s1758_s10 + $0x10] sm:$0xf]  ;;  %v385_v21 = vshrl.u32 %v1087_v9, 16  ;;  %v387_v22 = vshll.u32 %v1087_v9, 16  ;;  %v331_v23 = vld [vmem:[%s1758_s10 + $0x14] sm:$0x1]  ;;  %v1090_v27 = vcombine.low %v1802_v13, %v333_v17  ;;  %v1099_v59 = vcombine.low %v1792_v7, %v1792_v7 }
  0xa0   : > { %v413_v19 = vshrl.u32 %v1091_v10, 16  ;;  %v415_v20 = vshll.u32 %v1091_v10, 16  ;;  %v420_v24 = vshrl.u32 %v1092_v14, 16  ;;  %v422_v25 = vshll.u32 %v1092_v14, 16  ;;  %v1815_v28 = vld [vmem:[%s1758_s10 + $0x38] sm:$0xf] }
  0xa1   : > { %v396_v26 = vrot.slane %v394_v16, 1  ;;  %v389_v30 = vrot.slane %v387_v22, 1  ;;  %v1089_v31 = vcombine.low %v1810_v18, %v331_v23  ;;  %v341_v32 = vld [vmem:[%s1758_s10 + $0x3c] sm:$0x1]  ;;  %v1820_v33 = vld [vmem:[%s1758_s10 + $0x30] sm:$0xf]  ;;  %v1098_v60 = vcombine.low %v1802_v13, %v1802_v13 }
  0xa2   : > { %v417_v29 = vrot.slane %v415_v20, 1  ;;  %v424_v34 = vrot.slane %v422_v25, 1  ;;  %v408_v35 = vshll.u32 %v1090_v27, 16  ;;  %v339_v36 = vld [vmem:[%s1758_s10 + $0x34] sm:$0x1]  ;;  %v406_v40 = vshrl.u32 %v1090_v27, 16 }
  0xa3   : > { %v390_v38 = vor.u32 %v389_v30, %v385_v21  ;;  %v401_v39 = vshll.u32 %v1089_v31, 16  ;;  %v1094_v42 = vcombine.low %v1815_v28, %v341_v32  ;;  %v1093_v43 = vcombine.low %v1820_v33, %v339_v36  ;;  %s1492_s26 = smov 8   ;;  %s1493_s9 = smov 12   ;;  %v1273_v1 = vld [vmem:[#allocation5] sm:$0xff]   ;;  %v1274_v4 = vld [vmem:[#allocation5 + $0x8] sm:$0xff]  }
  0xa4   : > { %v1823_v37 = vor.u32 %v417_v29, %v413_v19  ;;  %v410_v41 = vrot.slane %v408_v35, 1  ;;  %v1830_v44 = vor.u32 %v424_v34, %v420_v24  ;;  %v1832_v45 = vor.u32 %v396_v26, %v392_v15  ;;  %s1494_s21 = smov 24   ;;  %1130 = vmatprep.subr.bf16.mxu0 %v1273_v1  ;;  %1144 = vmatprep.subr.bf16.mxu1 %v1273_v1  ;;  %v342_v5 = vld [vmem:[%s1758_s10 + $0x40] sm:$0xf]  ;;  %s1495_s11 = smov 32   ;;  %v789_v21 = vld [vmem:[%s1770_s29] sm:$0xff] }
  0xa5   : > { %440 = vrot.lane.b32.xlu0 %v390_v38, %s1492_s26  ;;  %v399_v46 = vshrl.u32 %v1089_v31, 16  ;;  %v403_v47 = vrot.slane %v401_v39, 1  ;;  %v436_v48 = vshll.u32 %v1094_v42, 16  ;;  %v429_v49 = vshll.u32 %v1093_v43, 16  ;;  %1131 = vmatpush3.bf16.msra.mxu0 %v1273_v1  ;;  %s1086_s23 = sshll.u32 %s1754_s2, 6  ;;  %s1122_s30 = sshll.u32 %s1475_s18, 10 }
  0xa6   : > { %448 = vrot.lane.b32.xlu1 %v1823_v37, %s1492_s26  ;;  %v1834_v50 = vor.u32 %v410_v41, %v406_v40  ;;  %v434_v51 = vshrl.u32 %v1094_v42, 16  ;;  %v427_v54 = vshrl.u32 %v1093_v43, 16  ;;  %v1097_v61 = vcombine.low %v1810_v18, %v1810_v18  ;;  %1147 = vmatpush3.bf16.msra.mxu1 %v1273_v1  ;;  %v1275_v6 = vld [vmem:[#allocation5 + $0x10] ss:$0 sps:$4 sm:$0x33]   ;;  %s322_s6 = scalar_lea.vmem [#allocation10], %s1086_s23  ;;  %s1983_s12 = scalar_lea.hbm %s2042_s4, %s1122_s30 }
  0xa7   : > { %v404_v52 = vor.u32 %v403_v47, %v399_v46  ;;  %v438_v53 = vrot.slane %v436_v48, 1  ;;  %v431_v55 = vrot.slane %v429_v49, 1  ;;  %v1102_v62 = vcombine.low %v1815_v28, %v1815_v28  ;;  %1132 = vmatprep.subr.bf16.mxu0 %v1274_v4  ;;  %1145 = vmatprep.subr.bf16.mxu1 %v1274_v4  ;;  %s937_s13 = sshll.u32 %s322_s6, 4  ;;  %s921_s18 = scalar_lea.sflag [#allocation4], %s1754_s2  ;;  %s1986_s13 = int_to_ptr.vmem [resolvable:$true] %s937_s13 }
  0xa8   : > { %v1101_v63 = vcombine.low %v1820_v33, %v1820_v33  ;;  %vm712_vm0 = vcmask 1041408   ;;  %v1103_v8 = vcombine.low %v342_v5, %v342_v5  ;;  %v795_v14 = vlaneseq  ;;  %s1393_s25 = scalar_lea.vmem %s1986_s13, 1024  ;;  %p2070_p1 = scmp.ne.s32.totalorder %s2055_s27, 0 }
  0xa9   : > { %442 = vrot.lane.b32.xlu0 %v1832_v45, %s1492_s26  ;;  %v1843_v56 = vor.u32 %v438_v53, %v434_v51  ;;  %v1845_v57 = vor.u32 %v431_v55, %v427_v54  ;;  %1133 = vmatpush3.bf16.msra.mxu0 %v1274_v4  ;;  %v714_v9 = vsel %vm712_vm0, %v1275_v6, 0  ;;  %v1496_v15 = vmov 0   ;;  %p1394_p10 = scmp.ne.s32.totalorder %s1986_s13, %s1393_s25  ;;  %s1498_s5 = smov [#allocation10]  }
  0xaa   : > { %450 = vrot.lane.b32.xlu1 %v1830_v44, %s1492_s26  ;;  %1148 = vmatpush3.bf16.msra.mxu1 %v1274_v4  ;;  %v1497_v16 = vmov 1966171168   ;;  %v796_v22 = vshrl.u32 %v795_v14, 7  ;;  %v791_v24 = vcombine.high %v789_v21, %v789_v21  ;;  %vm549_vm1 = vcmask 64512  }
  0xab   : > { %1150 = vmatprep.subr.msk.bf16.mxu0 %vm712_vm0, %v1275_v6  ;;  %1151 = vmatprep.subr.msk.bf16.mxu1 %vm712_vm0, %v1275_v6  ;;  %v793_v17 = vunpack.c.l.s4 %v1497_v16  ;;  %vm566_vm2 = vcmask 97280   ;;  %vm583_vm3 = vcmask 130048   ;;  %vm592_vm4 = vcmask 162816   ;;  %p1395_p0 = pnand %p1394_p10, %p2070_p1 }
  0xac   : > { %1254 = vset.pattern.permute.xlu1 %v1496_v15  ;;  %1253 = vset.pattern.permute.xlu0 %v1496_v15  ;;  %v842_v29 = vsub.s32 0, %v796_v22  ;;  %vm609_vm5 = vcmask 195584   ;;  %vm626_vm6 = vcmask 228352   ;;  %vm635_vm7 = vcmask 261120  }
  0xad   : > { %444 = vrot.lane.b32.xlu0 %v404_v52, %s1492_s26  ;;  %1135 = vmatpush3.bf16.msra.mxu0 %v714_v9  ;;  %v794_v23 = vunpack.c.0.s8 %v793_v17  ;;  %vm699_vm8 = vcmask 293888   ;;  %p1396_p11 = pneg %p1395_p0 }
  0xae   : > { %446 = vrot.lane.b32.xlu1 %v1834_v50, %s1492_s26  ;;  %1149 = vmatpush3.bf16.msra.mxu1 %v714_v9 }
  0xaf   : > { %v797_v25 = vsub.s32 %v794_v23, %v796_v22 }
  0xb1   : > { %452 = vrot.lane.b32.xlu0 %v1845_v57, %s1492_s26  ;;  %v798_v27 = vrot.slane %v789_v21, %v797_v25  ;;  %v805_v30 = vrot.slane %v791_v24, %v797_v25 }
  0xb2   : > { %454 = vrot.lane.b32.xlu1 %v1843_v56, %s1492_s26 }
  0xb3   : > { %v806_v31 = vcombine.high %v798_v27, %v798_v27  ;;  %v814_v32 = vrot.slane %v798_v27, %v797_v25  ;;  %v807_v34 = vcombine.high %v805_v30, %v805_v30  ;;  %v821_v43 = vrot.slane %v805_v30, %v797_v25 }
  0xb5   : > { %472 = vrot.lane.b32.xlu0 %v1099_v59, %s1491_s24  ;;  %v828_v35 = vrot.slane %v806_v31, %v797_v25  ;;  %v843_v36 = vrot.slane %v814_v32, %v842_v29  ;;  %v835_v41 = vrot.slane %v807_v34, %v797_v25  ;;  %v859_v46 = vrot.slane %v821_v43, %v842_v29 }
  0xb6   : > { %474 = vrot.lane.b32.xlu1 %v1100_v58, %s1491_s24  ;;  %v837_v47 = vcombine.high %v821_v43, %v821_v43 }
  0xb7   : > { %v847_v39 = vrot.slane %v828_v35, %v842_v29  ;;  %v838_v40 = vcombine.high %v828_v35, %v828_v35 }
  0xb8   : > { %v867_v49 = vrot.slane %v837_v47, %v842_v29 }
  0xb9   : > { %468 = vrot.lane.b32.xlu0 %v1097_v61, %s1491_s24  ;;  %v855_v42 = vrot.slane %v838_v40, %v842_v29 }
  0xba   : > { %470 = vrot.lane.b32.xlu1 %v1098_v60, %s1491_s24 }
  0xbd   : > { %476 = vrot.lane.b32.xlu0 %v1101_v63, %s1491_s24 }
  0xbe   : > { %478 = vrot.lane.b32.xlu1 %v1102_v62, %s1491_s24 }
  0xc1   : > { %480 = vrot.lane.b32.xlu0 %v390_v38, %s1493_s9  ;;  %v836_v38 = vcombine.high %v814_v32, %v814_v32 }
  0xc2   : > { %482 = vrot.lane.b32.xlu1 %v1832_v45, %s1493_s9 }
  0xc5   : > { %488 = vrot.lane.b32.xlu0 %v1823_v37, %s1493_s9 }
  0xc6   : > { %490 = vrot.lane.b32.xlu1 %v1830_v44, %s1493_s9 }
  0xc9   : > { %484 = vrot.lane.b32.xlu0 %v404_v52, %s1493_s9 }
  0xca   : > { %486 = vrot.lane.b32.xlu1 %v1834_v50, %s1493_s9 }
  0xcd   : > { %492 = vrot.lane.b32.xlu0 %v1845_v57, %s1493_s9 }
  0xce   : > { %494 = vrot.lane.b32.xlu1 %v1843_v56, %s1493_s9 }
  0xd1   : > { %499 = vrot.lane.b32.xlu0 %v1785_v3, %s1494_s21  ;;  %v343_v3 = vld [vmem:[%s1758_s10 + $0x44] sm:$0x1]  ;;  %s1397_s10 = sshll.u32 %s1498_s5, 4  ;;  %s1398_s10 = int_to_ptr.vmem [resolvable:$false] %s1397_s10 }
  0xd2   : > { %501 = vrot.lane.b32.xlu1 %v1097_v61, %s1494_s21  ;;  %v1104_v10 = vcombine.low %v342_v5, %v343_v3  ;;  %s1399_s0 = scalar_lea.vmem %s1398_s10, 2048  ;;  %p1400_p5 = scmp.lt.s32.totalorder %s1986_s13, %s1398_s10 }
  0xd3   : > { %p1401_p2 = scmp.lt.s32.totalorder %s1399_s0, %s1393_s25 }
  0xd4   : > { %v521_v12 = vshll.u32 %v1104_v10, 16  ;;  %v519_v19 = vshrl.u32 %v1104_v10, 16 }
  0xd5   : > { %507 = vrot.lane.b32.xlu0 %v1100_v58, %s1494_s21  ;;  %p1402_p6 = por %p1401_p2, %p1400_p5 }
  0xd6   : > { %509 = vrot.lane.b32.xlu1 %v1101_v63, %s1494_s21  ;;  %v523_v20 = vrot.slane %v521_v12, 1 }
  0xd7   : > { %p1403_p13 = pnand %p1402_p6, %p1396_p11 }
  0xd8   : > { %v524_v26 = vor.u32 %v523_v20, %v519_v19 }
  0xd9   : > { %503 = vrot.lane.b32.xlu0 %v1098_v60, %s1494_s21 }
  0xda   : > { %505 = vrot.lane.b32.xlu1 %v1099_v59, %s1494_s21 }
  0xdd   : > { %511 = vrot.lane.b32.xlu0 %v1102_v62, %s1494_s21 }
  0xde   : > { %513 = vrot.lane.b32.xlu1 %v1103_v8, %s1494_s21 }
  0xe1   : > { %525 = vrot.lane.b32.xlu0 %v1832_v45, %s1495_s11  ;;  %v839_v45 = vcombine.high %v835_v41, %v835_v41 }
  0xe2   : > { %527 = vrot.lane.b32.xlu1 %v404_v52, %s1495_s11 }
  0xe3   : > { %v871_v48 = vrot.slane %v839_v45, %v842_v29 }
  0xe5   : > { %533 = vrot.lane.b32.xlu0 %v1830_v44, %s1495_s11  ;;  %v863_v44 = vrot.slane %v835_v41, %v842_v29 }
  0xe6   : > { %535 = vrot.lane.b32.xlu1 %v1845_v57, %s1495_s11 }
  0xe9   : > { %529 = vrot.lane.b32.xlu0 %v1834_v50, %s1495_s11 }
  0xea   : > { %531 = vrot.lane.b32.xlu1 %v1823_v37, %s1495_s11  ;;  %v851_v37 = vrot.slane %v836_v38, %v842_v29 }
  0xed   : > { %537 = vrot.lane.b32.xlu0 %v1843_v56, %s1495_s11 }
  0xee   : > { %539 = vrot.lane.b32.xlu1 %v524_v26, %s1495_s11 }
  0xf1   : > { %873 = vperm.xlu0 %1253, %v843_v36  }
  0xf2   : > { %877 = vperm.xlu1 %1254, %v847_v39  }
  0xf5   : > { %885 = vperm.xlu0 %1253, %v855_v42  }
  0xf6   : > { %881 = vperm.xlu1 %1254, %v851_v37  }
  0xf9   : > { %893 = vperm.xlu0 %1253, %v863_v44  }
  0xfa   : > { %889 = vperm.xlu1 %1254, %v859_v46  }
  0xfd   : > { %901 = vperm.xlu0 %1253, %v871_v48  }
  0xfe   : > { %897 = vperm.xlu1 %1254, %v867_v49  }
 0x110   : > { %v467_v50 = vpop.permute.xlu1 %466 }
 0x111   : > { %v465_v51 = vpop.permute.xlu0 %464 }
 0x117   : > { %v441_v53 = vpop.permute.xlu0 %440 }
 0x118   : > { %v449_v52 = vpop.permute.xlu1 %448  ;;  %v551_v20 = vsel %vm549_vm1, %v1781_v2, %v441_v53 }
 0x119   : > { %v568_v22 = vsel %vm566_vm2, %v551_v20, %v465_v51  ;;  %v559_v26 = vsel %vm549_vm1, %v1792_v7, %v449_v52 }
 0x11a   : > { %v584_v29 = vsel %vm583_vm3, %v568_v22, %v465_v51 }
 0x11b   : > { %v443_v55 = vpop.permute.xlu0 %442 }
 0x11c   : > { %v451_v54 = vpop.permute.xlu1 %450  ;;  %v553_v21 = vsel %vm549_vm1, %v1777_v0, %v443_v55 }
 0x11d   : > { %v570_v23 = vsel %vm566_vm2, %v553_v21, %v467_v50  ;;  %v561_v27 = vsel %vm549_vm1, %v1798_v11, %v451_v54 }
 0x11e   : > { %v585_v2 = vsel %vm583_vm3, %v570_v23, %v467_v50 }
 0x11f   : > { %v445_v57 = vpop.permute.xlu0 %444 }
 0x120   : > { %v447_v56 = vpop.permute.xlu1 %446  ;;  %v555_v38 = vsel %vm549_vm1, %v1810_v18, %v445_v57 }
 0x121   : > { %v557_v11 = vsel %vm549_vm1, %v1802_v13, %v447_v56 }
 0x123   : > { %v1887_v59 = vpop.permute.xlu0 %452 }
 0x124   : > { %v1885_v58 = vpop.permute.xlu1 %454  ;;  %v563_v51 = vsel %vm549_vm1, %v1820_v33, %v1887_v59 }
 0x125   : > { %v565_v50 = vsel %vm549_vm1, %v1815_v28, %v1885_v58 }
 0x127   : > { %v473_v61 = vpop.permute.xlu0 %472 }
 0x128   : > { %v475_v60 = vpop.permute.xlu1 %474  ;;  %v576_v30 = vsel %vm566_vm2, %v559_v26, %v473_v61 }
 0x129   : > { %v578_v0 = vsel %vm566_vm2, %v561_v27, %v475_v60  ;;  %v588_v40 = vsel %vm583_vm3, %v576_v30, %v473_v61 }
 0x12a   : > { %v589_v39 = vsel %vm583_vm3, %v578_v0, %v475_v60 }
 0x12b   : > { %v469_v63 = vpop.permute.xlu0 %468 }
 0x12c   : > { %v471_v62 = vpop.permute.xlu1 %470  ;;  %v572_v37 = vsel %vm566_vm2, %v555_v38, %v469_v63 }
 0x12d   : > { %v574_v41 = vsel %vm566_vm2, %v557_v11, %v471_v62  ;;  %v586_v54 = vsel %vm583_vm3, %v572_v37, %v469_v63 }
 0x12e   : > { %v587_v53 = vsel %vm583_vm3, %v574_v41, %v471_v62 }
 0x12f   : > { %v1891_v4 = vpop.permute.xlu0 %476 }
 0x130   : > { %v1889_v1 = vpop.permute.xlu1 %478  ;;  %v580_v56 = vsel %vm566_vm2, %v563_v51, %v1891_v4 }
 0x131   : > { %v582_v55 = vsel %vm566_vm2, %v565_v50, %v1889_v1 }
 0x133   : > { %v481_v6 = vpop.permute.xlu0 %480 }
 0x134   : > { %v483_v5 = vpop.permute.xlu1 %482  ;;  %v594_v32 = vsel %vm592_vm4, %v584_v29, %v481_v6 }
 0x135   : > { %v596_v31 = vsel %vm592_vm4, %v585_v2, %v483_v5 }
 0x137   : > { %v489_v3 = vpop.permute.xlu0 %488 }
 0x138   : > { %v491_v8 = vpop.permute.xlu1 %490  ;;  %v602_v43 = vsel %vm592_vm4, %v588_v40, %v489_v3  ;;  %v590_v3 = vsel %vm583_vm3, %v580_v56, %v1891_v4 }
 0x139   : > { %v604_v42 = vsel %vm592_vm4, %v589_v39, %v491_v8  ;;  %v591_v8 = vsel %vm583_vm3, %v582_v55, %v1889_v1 }
 0x13b   : > { %v485_v10 = vpop.permute.xlu0 %484 }
 0x13c   : > { %v487_v9 = vpop.permute.xlu1 %486  ;;  %v598_v60 = vsel %vm592_vm4, %v586_v54, %v485_v10 }
 0x13d   : > { %v600_v57 = vsel %vm592_vm4, %v587_v53, %v487_v9 }
 0x13f   : > { %v1895_v14 = vpop.permute.xlu0 %492 }
 0x140   : > { %v1893_v12 = vpop.permute.xlu1 %494  ;;  %v606_v10 = vsel %vm592_vm4, %v590_v3, %v1895_v14 }
 0x141   : > { %v608_v9 = vsel %vm592_vm4, %v591_v8, %v1893_v12 }
 0x143   : > { %v500_v16 = vpop.permute.xlu0 %499 }
 0x144   : > { %v502_v15 = vpop.permute.xlu1 %501  ;;  %v611_v36 = vsel %vm609_vm5, %v594_v32, %v500_v16 }
 0x145   : > { %v613_v7 = vsel %vm609_vm5, %v596_v31, %v502_v15  ;;  %v627_v13 = vsel %vm626_vm6, %v611_v36, %v500_v16  ;;  %v1105_v31 = vld [vmem:[#allocation7] ss:$0 sm:$0xff] }
 0x146   : > { %v628_v44 = vsel %vm626_vm6, %v613_v7, %v502_v15 }
 0x147   : > { %v508_v19 = vpop.permute.xlu0 %507 }
 0x148   : > { %v510_v17 = vpop.permute.xlu1 %509  ;;  %v619_v47 = vsel %vm609_vm5, %v602_v43, %v508_v19 }
 0x149   : > { %v621_v46 = vsel %vm609_vm5, %v604_v42, %v510_v17  ;;  %v631_v58 = vsel %vm626_vm6, %v619_v47, %v508_v19 }
 0x14a   : > { %v632_v28 = vsel %vm626_vm6, %v621_v46, %v510_v17 }
 0x14b   : > { %v504_v25 = vpop.permute.xlu0 %503 }
 0x14c   : > { %v506_v24 = vpop.permute.xlu1 %505  ;;  %v615_v62 = vsel %vm609_vm5, %v598_v60, %v504_v25 }
 0x14d   : > { %v617_v61 = vsel %vm609_vm5, %v600_v57, %v506_v24  ;;  %v629_v16 = vsel %vm626_vm6, %v615_v62, %v504_v25 }
 0x14e   : > { %v630_v15 = vsel %vm626_vm6, %v617_v61, %v506_v24 }
 0x14f   : > { %v512_v35 = vpop.permute.xlu0 %511 }
 0x150   : > { %v514_v34 = vpop.permute.xlu1 %513  ;;  %v623_v1 = vsel %vm609_vm5, %v606_v10, %v512_v35 }
 0x151   : > { %v625_v20 = vsel %vm609_vm5, %v608_v9, %v514_v34  ;;  %v633_v22 = vsel %vm626_vm6, %v623_v1, %v512_v35 }
 0x152   : > { %v634_v14 = vsel %vm626_vm6, %v625_v20, %v514_v34 }
 0x153   : > { %v526_v18 = vpop.permute.xlu0 %525 }
 0x154   : > { %v528_v45 = vpop.permute.xlu1 %527  ;;  %v637_v49 = vsel %vm635_vm7, %v627_v13, %v526_v18 }
 0x155   : > { %v639_v48 = vsel %vm635_vm7, %v628_v44, %v528_v45 }
 0x156   : > { %v1106_v52 = vcombine.low %v637_v49, %v639_v48 }
 0x157   : > { %v534_v59 = vpop.permute.xlu0 %533 }
 0x158   : > { %v536_v33 = vpop.permute.xlu1 %535  ;;  %1136 = vmatprep.mubr.msk.bf16.mxu0 %vm699_vm8, %v1106_v52  ;;  %v645_v5 = vsel %vm635_vm7, %v631_v58, %v534_v59 }
 0x159   : > { %v647_v63 = vsel %vm635_vm7, %v632_v28, %v536_v33 }
 0x15a   : > { %v1108_v6 = vcombine.low %v645_v5, %v647_v63 }
 0x15b   : > { %v530_v19 = vpop.permute.xlu0 %529 }
 0x15c   : > { %v532_v17 = vpop.permute.xlu1 %531  ;;  %1140 = vmatprep.mubr.msk.bf16.mxu1 %vm699_vm8, %v1108_v6  ;;  %v641_v21 = vsel %vm635_vm7, %v629_v16, %v530_v19 }
 0x15d   : > { %v643_v4 = vsel %vm635_vm7, %v630_v15, %v532_v17 }
 0x15e   : > { %v1107_v12 = vcombine.low %v641_v21, %v643_v4 }
 0x15f   : > { %v538_v24 = vpop.permute.xlu0 %537 }
 0x160   : > { %v540_v23 = vpop.permute.xlu1 %539  ;;  %1137 = vmatmul.mubr.msk.bf16.vlgmr.msra.gmra.mrb[0].mxu0 %vm699_vm8, %v1107_v12  ;;  %v649_v26 = vsel %vm635_vm7, %v633_v22, %v538_v24 }
 0x161   : > { %v651_v25 = vsel %vm635_vm7, %v634_v14, %v540_v23 }
 0x162   : > { %v1109_v27 = vcombine.low %v649_v26, %v651_v25 }
 0x164   : > { %1141 = vmatmul.mubr.msk.bf16.vlgmr.msra.gmra.mrb[0].mxu1 %vm699_vm8, %v1109_v27 }
 0x170   : > { %v874_v29 = vpop.permute.xlu0 %873 }
 0x171   : > { %v878_v2 = vpop.permute.xlu1 %877 }
 0x174   : > { %v886_v30 = vpop.permute.xlu0 %885 }
 0x175   : > { %v882_v0 = vpop.permute.xlu1 %881 }
 0x178   : > { %v894_v41 = vpop.permute.xlu0 %893 }
 0x179   : > { %v890_v7 = vpop.permute.xlu1 %889 }
 0x17c   : > { %v902_v58 = vpop.permute.xlu0 %901 }
 0x17d   : > { %v898_v54 = vpop.permute.xlu1 %897 }
 0x233   : > { %v1138_v32 = vpop.f32.mrb[0].mxu0 }
 0x234   : > { %v759_v34 = vadd.f32 %v1138_v32, %v1105_v31  ;;  %v750_v35 = vpop.f32.mrb[1].mxu0 }
 0x235   : > { %v751_v36 = vadd.f32 %v1105_v31, %v750_v35  ;;  %v1139_v11 = vpop.f32.mrb[2].mxu0 }
 0x236   : > { %v783_v38 = vmax.f32 %v759_v34, 0.0  ;;  %v762_v39 = vadd.f32 %v1139_v11, %v1105_v31  ;;  %v753_v40 = vpop.f32.mrb[3].mxu0 }
 0x237   : > { %v781_v37 = vmax.f32 %v751_v36, 0.0  ;;  %v754_v42 = vadd.f32 %v1105_v31, %v753_v40  ;;  %v1142_v43 = vpop.f32.mrb[0].mxu1 }
 0x238   : > { %v906_v44 = vmul.f32 %v882_v0, %v783_v38  ;;  %v784_v13 = vmax.f32 %v762_v39, 0.0  ;;  %v775_v45 = vadd.f32 %v1142_v43, %v1105_v31  ;;  %v766_v18 = vpop.f32.mrb[1].mxu1 }
 0x239   : > { %v904_v46 = vmul.f32 %v874_v29, %v781_v37  ;;  %v782_v47 = vmax.f32 %v754_v42, 0.0  ;;  %v767_v48 = vadd.f32 %v1105_v31, %v766_v18  ;;  %v1143_v49 = vpop.f32.mrb[2].mxu1 }
 0x23a   : > { %914 = vst.msk [vmem:[%s322_s6 + $0x10] sm:$0xff] %vm635_vm7, %v906_v44  ;;  %v907_v50 = vmul.f32 %v886_v30, %v784_v13  ;;  %v787_v51 = vmax.f32 %v775_v45, 0.0  ;;  %v778_v52 = vadd.f32 %v1143_v49, %v1105_v31  ;;  %v769_v53 = vpop.f32.mrb[3].mxu1 }
 0x23b   : > { %912 = vst.msk [vmem:[%s322_s6] sm:$0xff] %vm635_vm7, %v904_v46  ;;  %v905_v55 = vmul.f32 %v878_v2, %v782_v47  ;;  %v785_v56 = vmax.f32 %v767_v48, 0.0  ;;  %v770_v57 = vadd.f32 %v1105_v31, %v769_v53 }
 0x23c   : > { %915 = vst.msk [vmem:[%s322_s6 + $0x18] sm:$0xff] %vm635_vm7, %v907_v50  ;;  %v910_v60 = vmul.f32 %v898_v54, %v787_v51  ;;  %v788_v28 = vmax.f32 %v778_v52, 0.0 }
 0x23d   : > { %913 = vst.msk [vmem:[%s322_s6 + $0x8] sm:$0xff] %vm635_vm7, %v905_v55  ;;  %v908_v33 = vmul.f32 %v890_v7, %v785_v56  ;;  %v786_v59 = vmax.f32 %v770_v57, 0.0 }
 0x23e   : > { %918 = vst.msk [vmem:[%s322_s6 + $0x30] sm:$0xff] %vm635_vm7, %v910_v60  ;;  %v911_v61 = vmul.f32 %v902_v58, %v788_v28 }
 0x23f   : > { %916 = vst.msk [vmem:[%s322_s6 + $0x20] sm:$0xff] %vm635_vm7, %v908_v33  ;;  %v909_v62 = vmul.f32 %v894_v41, %v786_v59 }
 0x240   : > { %919 = vst.msk [vmem:[%s322_s6 + $0x38] sm:$0xff] %vm635_vm7, %v911_v61 }
 0x241   : > { %917 = vst.msk [vmem:[%s322_s6 + $0x28] sm:$0xff] %vm635_vm7, %v909_v62 }
 0x242   : > { %1406 = shalt.err (!%p1403_p13)
}
 0x243   : > { %s1407_s1 = scalar_lea.hbm %s1983_s12, 1024  ;;  %s1411_s9 = scalar_lea.hbm %s2042_s4, 2048 }
 0x244   : > { %p1408_p3 = scmp.ne.s32.totalorder %s1983_s12, %s1407_s1  ;;  %p1412_p7 = scmp.lt.u32.totalorder %s1983_s12, %s2042_s4 }
 0x245   : > { %p1413_p12 = scmp.lt.u32.totalorder %s1411_s9, %s1407_s1  ;;  %p1415_p10 = scmp.lt.u32.totalorder %s1407_s1, %s1983_s12 }
 0x246   : > { %p1409_p4 = pnand %p1408_p3, %p2070_p1 }
 0x247   : > { %p1414_p9 = por %p1413_p12, %p1412_p7 }
 0x248   : > { %p1410_p8 = pneg %p1409_p4 }
 0x249   : > { %p1416_p0 = por %p1415_p10, %p1414_p9 }
 0x24b   : > { %p1417_p11 = pnand %p1416_p0, %p1410_p8 }
 0x24d   : > { %1420 = shalt.err (!%p1417_p11)
}
 0x24e   : > { %s1499_s23 = smov 128  }
 0x24f   : > { %1167 = dma.vmem_to_hbm [thread:$0]  (%p2070_p1), %s1986_s13, 1024, %s1983_s12, %s921_s18, %s1499_s23, %s1499_s23, %s1492_s26  }
 0x250 PF: > { %s952_s6 = sand.u32 1, %s1463_s15   ;;  %p2071_p5 = scmp.ne.s32.totalorder %s2056_s28, 0 }
 0x251   : > { %p2072_p2 = scmp.ge.s32.totalorder %s1483_s20, 2  ;;  %s953_s30 = scalar_lea.sflag [#allocation4], %s952_s6 }
 0x253   : > { %p1184_p6 = pnand %p2072_p2, %p2071_p5 }
 0x255   : > { %1458 = dma.done.wait (!%p1184_p6), %s953_s30, 1024  }
 0x256   : > { %1460 = vsyncadd (!%p1184_p6), %s953_s30, 4294966272  ;;  %s24_s20 = sadd.s32 1, %s1483_s20   ;;  %s2073_s15 = smov %s1467_s16 }
 0x257   : > { %p21_p13 = scmp.ge.s32.totalorder %s24_s20, 4   ;;  %s2074_s16 = smov %s1471_s17 }
 0x258   : > { %s2075_s17 = smov %s1689_s7  ;;  %s2076_s18 = smov %s1479_s19 }
 0x259   : > { %s2077_s19 = smov %s2079_s14  ;;  %23 = sbr.rel (!%p21_p13) target bundleno = 13 (0xd), region = 104 }
 0x260   :  { %958 = vsyncpa [#allocation3], 1 }
 0x261   :  { %960 = vsyncpa [#allocation3 + $0x1], 1 }
 0x262   :  { %961 = vsyncpa [#allocation6], 1 }
 0x263   :  { %962 = vsyncpa [#allocation9], 1 }
 0x264   :  { %964 = vsyncpa [#allocation9 + $0x1], 1 }
 0x265   :  { %965 = vsyncpa [#allocation4], 1 }
 0x266   :  { %967 = vsyncpa [#allocation4 + $0x1], 1 }

</bundles_post_ra>
